<compile_context>
chip_gen: v7x
topology: tpu7x:2x2x1
jax: 0.10.0
libtpu: 0.0.40
codegen_flags: <defaults>
</compile_context>

<pallas_src>
import functools

import jax
import jax.numpy as jnp
from jax import lax
from jax.experimental import pallas as pl
from jax.experimental.pallas import tpu as pltpu

NEG = -1.0e30  # finite "minus infinity" keeps the log-sum-exp NaN-free


# --------------------------------------------------------------------------------------
# Kernel 1: masked L1 + MSE + BCEWithLogits (pos_weight) reductions, tiled over L
# --------------------------------------------------------------------------------------
def _frame_losses_kernel(olens_ref, after_ref, before_ref, ys_ref, logits_ref, stop_ref,
                         out_ref, *, pos_weight):
    li = pl.program_id(0)
    nl = pl.num_programs(0)

    @pl.when(li == 0)
    def _():
        out_ref[...] = jnp.zeros_like(out_ref)

    B, Lb, D = after_ref.shape
    base = li * Lb

    # make_non_pad_mask(olens) restricted to this L-tile: True where (base + t) < olens[b]
    olens3 = olens_ref[...].reshape(B, 1, 1)
    t = base + lax.broadcasted_iota(jnp.int32, (B, Lb, 1), 1)
    m2 = (t < olens3).astype(jnp.float32)                      # (B, Lb, 1), reused below

    ys = ys_ref[...]
    da = after_ref[...] - ys
    db = before_ref[...] - ys
    l1_part = jnp.sum((jnp.abs(da) + jnp.abs(db)) * m2)        # mask broadcasts over odim
    mse_part = jnp.sum((da * da + db * db) * m2)

    # BCEWithLogitsLoss with pos_weight, per element:
    #   (1 - y) * x + (1 + (pw - 1) * y) * softplus(-x)
    x = logits_ref[...]                                        # (B, Lb, 1)
    y = stop_ref[...]
    softplus_neg_x = jnp.maximum(-x, 0.0) + jnp.log(1.0 + jnp.exp(-jnp.abs(x)))
    bce = (1.0 - y) * x + (1.0 + (pos_weight - 1.0) * y) * softplus_neg_x
    bce_part = jnp.sum(bce * m2)
    nf_part = jnp.sum(m2)                                      # selected frames this tile

    # Accumulate partial sums in the resident output block (rows broadcast over lanes).
    out_ref[0:1, :] = out_ref[0:1, :] + l1_part
    out_ref[1:2, :] = out_ref[1:2, :] + mse_part
    out_ref[2:3, :] = out_ref[2:3, :] + bce_part
    out_ref[3:4, :] = out_ref[3:4, :] + nf_part

    @pl.when(li == nl - 1)
    def _():
        # NOTE: if all olens are 0 this divides by zero (NaN), matching torch's mean of
        # an empty selection; lengths are assumed >= 1.
        nf = out_ref[3:4, 0:1]                                 # (1, 1) frame count
        ne = nf * D                                            # feature-element count
        out_ref[0:1, :] = out_ref[0:1, :] / ne
        out_ref[1:2, :] = out_ref[1:2, :] / ne
        out_ref[2:3, :] = out_ref[2:3, :] / nf


def _choose_l_block(L, target=512):
    """Largest divisor of L that is a multiple of 8 and <= target (or L itself)."""
    if L <= target:
        return L
    for cand in range(target, 7, -1):
        if L % cand == 0 and cand % 8 == 0:
            return cand
    return L


def frame_losses(after, before, ys, logits, stop_labels, olens, pos_weight):
    B, L, D = after.shape
    l_block = _choose_l_block(L)
    n_blocks = L // l_block
    logits3 = logits.reshape(B, L, 1)
    stop3 = stop_labels.reshape(B, L, 1)
    olens2 = olens.astype(jnp.int32).reshape(B, 1)
    kernel = functools.partial(_frame_losses_kernel, pos_weight=float(pos_weight))
    out = pl.pallas_call(
        kernel,
        grid=(n_blocks,),
        in_specs=[
            pl.BlockSpec((B, 1), lambda l: (0, 0)),
            pl.BlockSpec((B, l_block, D), lambda l: (0, l, 0)),
            pl.BlockSpec((B, l_block, D), lambda l: (0, l, 0)),
            pl.BlockSpec((B, l_block, D), lambda l: (0, l, 0)),
            pl.BlockSpec((B, l_block, 1), lambda l: (0, l, 0)),
            pl.BlockSpec((B, l_block, 1), lambda l: (0, l, 0)),
        ],
        out_specs=pl.BlockSpec((8, 128), lambda l: (0, 0)),
        out_shape=jax.ShapeDtypeStruct((8, 128), jnp.float32),
        compiler_params=pltpu.CompilerParams(
            dimension_semantics=("arbitrary",),            # reduction axis (accumulator)
            vmem_limit_bytes=64 * 1024 * 1024),
    )(olens2, after, before, ys, logits3, stop3)
    return out[0, 0], out[1, 0], out[2, 0]


# --------------------------------------------------------------------------------------
# Kernel 2: CTC loss (log_softmax + alpha recursion), a block of batch rows per grid step
# --------------------------------------------------------------------------------------
def _ctc_kernel(ll_ref, labels_ref, olens_ref, out_ref, e_ref, a_ref):
    Bb, T, C = ll_ref.shape
    L2 = 2 * T + 1
    blank = C - 1

    # log_softmax over the class (lane) axis, all Bb rows at once
    logits = ll_ref[...]                                       # (Bb, T, C)
    mx = jnp.max(logits, axis=-1, keepdims=True)
    z = logits - mx
    lse = jnp.log(jnp.sum(jnp.exp(z), axis=-1, keepdims=True))
    lp = z - lse                                               # (Bb, T, C)

    lab = labels_ref[...].astype(jnp.float32)                  # (Bb, T)

    # spread[j, 2j+1] = 1 maps label index j onto extended position 2j+1;
    # spread_prev[j, 2j+3] = 1 maps label j onto the position of label j+1.
    j_i = lax.broadcasted_iota(jnp.int32, (T, L2), 0)
    s_i = lax.broadcasted_iota(jnp.int32, (T, L2), 1)
    spread = (s_i == 2 * j_i + 1).astype(jnp.float32)
    spread_prev = (s_i == 2 * j_i + 3).astype(jnp.float32)

    lab_ext = jnp.dot(lab, spread, preferred_element_type=jnp.float32)        # (Bb, L2)
    lab_prev = jnp.dot(lab, spread_prev, preferred_element_type=jnp.float32)  # (Bb, L2)

    pos = lax.broadcasted_iota(jnp.int32, (Bb, L2), 1)
    is_odd = (pos & 1) == 1
    # skip transition (s-2 -> s) allowed only onto odd s >= 3 with label[j] != label[j-1]
    allow2 = is_odd & (pos >= 3) & (jnp.abs(lab_ext - lab_prev) > 0.5)

    # Fused emission table E[t, s] = lp[t, label[(s-1)//2]] at odd s, lp[t, blank] at even s,
    # built with one (T,C)@(C,L2) selection matmul per batch row (no (T,T) intermediate).
    # NOTE: default MXU precision is accepted: the selection matrix is exact 0/1 and the
    # <=2^-8 relative rounding of lp is immaterial for a training-loss value.
    cls = lax.broadcasted_iota(jnp.int32, (C, L2), 0)
    cls_f = cls.astype(jnp.float32)
    pos_row = lax.broadcasted_iota(jnp.int32, (1, L2), 1)
    odd_row = (pos_row & 1) == 1
    for b in range(Bb):                                        # static, Bb <= 8
        sel_b = jnp.where(odd_row,
                          jnp.abs(cls_f - lab_ext[b:b + 1, :]) < 0.5,
                          cls == blank).astype(jnp.float32)    # (C, L2)
        eb = jnp.dot(lp[b], sel_b, preferred_element_type=jnp.float32)  # (T, L2)
        e_ref[:, b:b + 1, :] = eb[:, None, :]
    # TODO(synk): for very long T (v7x, 64 MiB VMEM) the (T, Bb, L2) emission table should
    # be computed in time-tiles just-in-time instead of stored whole.

    t_lens = olens_ref[...]                                    # (Bb, 1) int32

    # alpha buffer with two NEG lanes of left padding so s-1 / s-2 are static slices
    a_ref[...] = jnp.full(a_ref.shape, NEG, dtype=jnp.float32)
    e0 = e_ref[0]                                              # (Bb, L2)
    a_ref[:, 2:2 + L2] = jnp.where((pos == 0) | (pos == 1), e0, NEG)

    def step(t, carry):
        cur = a_ref[:, 2:2 + L2]
        s1 = a_ref[:, 1:1 + L2]
        s2 = jnp.where(allow2, a_ref[:, 0:L2], NEG)
        m3 = jnp.maximum(jnp.maximum(cur, s1), s2)
        lse3 = m3 + jnp.log(jnp.exp(cur - m3) + jnp.exp(s1 - m3) + jnp.exp(s2 - m3))
        e_t = e_ref[pl.ds(t, 1)][0]                            # (Bb, L2)
        new = e_t + lse3
        a_ref[:, 2:2 + L2] = jnp.where(t < t_lens, new, cur)   # gate padded time steps
        return carry

    lax.fori_loop(1, T, step, 0, unroll=2)

    alpha = a_ref[:, 2:2 + L2]
    end = 2 * t_lens                                           # (Bb, 1)
    fin = (pos == end) | (pos == end - 1)
    av = jnp.where(fin, alpha, NEG)
    mf = jnp.max(av, axis=-1, keepdims=True)
    nll = -(mf + jnp.log(jnp.sum(jnp.exp(av - mf), axis=-1, keepdims=True)))  # (Bb, 1)
    out_ref[...] = jnp.broadcast_to(nll, out_ref.shape)


def ctc_losses(logits_labels, ys_labels, olens):
    B, T, C = logits_labels.shape
    L2 = 2 * T + 1
    b_block = 8 if B % 8 == 0 else B          # keep blocks (8,128)-legal for any B
    labels = ys_labels.astype(jnp.int32).reshape(B, T)
    olens2 = olens.astype(jnp.int32).reshape(B, 1)
    out = pl.pallas_call(
        _ctc_kernel,
        grid=(B // b_block,),
        in_specs=[
            pl.BlockSpec((b_block, T, C), lambda i: (i, 0, 0)),
            pl.BlockSpec((b_block, T), lambda i: (i, 0)),
            pl.BlockSpec((b_block, 1), lambda i: (i, 0)),
        ],
        out_specs=pl.BlockSpec((b_block, 128), lambda i: (i, 0)),
        out_shape=jax.ShapeDtypeStruct((B, 128), jnp.float32),
        scratch_shapes=[
            pltpu.VMEM((T, b_block, L2), jnp.float32),   # emission table E[t, b, s]
            pltpu.VMEM((b_block, L2 + 2), jnp.float32),  # alpha with 2-lane NEG padding
        ],
        compiler_params=pltpu.CompilerParams(
            dimension_semantics=("parallel",),           # batch blocks are independent
            vmem_limit_bytes=64 * 1024 * 1024),
    )(logits_labels, labels, olens2)
    return out[:, 0]   # per-batch CTC negative log-likelihood (reduction='none')


# --------------------------------------------------------------------------------------
# Module wrapper
# --------------------------------------------------------------------------------------
class Tacotron2LossPallas:
    def __init__(self, use_masking=True, use_weighted_masking=False,
                 bce_pos_weight=20.0, num_labels=128):
        # TODO(synk): use_weighted_masking branch not implemented (only default config).
        assert use_masking and not use_weighted_masking
        self.bce_pos_weight = bce_pos_weight
        self.num_labels = num_labels

    def __call__(self, after_outs, before_outs, logits, logits_labels,
                 ys, ys_labels, stop_labels, ilens, olens):
        del ilens  # unused, as in the reference forward
        l1, mse, bce = frame_losses(after_outs, before_outs, ys, logits,
                                    stop_labels, olens, self.bce_pos_weight)
        ctc_per_batch = ctc_losses(logits_labels, ys_labels, olens)
        ctc = jnp.mean(ctc_per_batch)
        return l1, mse, bce, ctc


if __name__ == "__main__":
    key = jax.random.PRNGKey(0)
    B, L, D = 2, 8, 16
    num_labels = 128
    C = num_labels + 1

    k = jax.random.split(key, 6)
    after_outs = jax.random.normal(k[0], (B, L, D), jnp.float32)
    before_outs = jax.random.normal(k[1], (B, L, D), jnp.float32)
    ys = jax.random.normal(k[2], (B, L, D), jnp.float32)
    logits = jax.random.normal(k[3], (B, L), jnp.float32)
    logits_labels = jax.random.normal(k[4], (B, L, C), jnp.float32)

    olens = jnp.array([8, 5], dtype=jnp.int32)
    ilens = jnp.array([8, 6], dtype=jnp.int32)

    t = jnp.arange(L)[None, :]
    stop_labels = (t == (olens[:, None] - 1)).astype(jnp.float32)

    # CTC targets with no adjacent repeats (keeps the loss finite since T == S here)
    base = jax.random.randint(k[5], (B, 1), 0, num_labels)
    ys_labels = ((base + 3 * jnp.arange(L)[None, :]) % num_labels).astype(jnp.int32)

    loss_mod = Tacotron2LossPallas(use_masking=True, use_weighted_masking=False,
                                   bce_pos_weight=20.0, num_labels=num_labels)
    l1, mse, bce, ctc = loss_mod(after_outs, before_outs, logits, logits_labels,
                                 ys, ys_labels, stop_labels, ilens, olens)
    jax.block_until_ready((l1, mse, bce, ctc))
    print("KERNEL_OK")
</pallas_src>

<mosaic_0001>
module attributes {stable_mosaic.version = 11 : i64} {
  func.func @_frame_losses_kernel(%arg0: i32, %arg1: memref<2x1xi32, #tpu.memory_space<vmem>>, %arg2: memref<2x8x16xf32, #tpu.memory_space<vmem>>, %arg3: memref<2x8x16xf32, #tpu.memory_space<vmem>>, %arg4: memref<2x8x16xf32, #tpu.memory_space<vmem>>, %arg5: memref<2x8x1xf32, #tpu.memory_space<vmem>>, %arg6: memref<2x8x1xf32, #tpu.memory_space<vmem>>, %arg7: memref<8x128xf32, #tpu.memory_space<vmem>>) attributes {dimension_semantics = [#tpu.dimension_semantics<arbitrary>], iteration_bounds = array<i64: 1>, scalar_prefetch = 0 : i64, scratch_operands = 0 : i64, tpu.core_type = #tpu.core_type<tc>, window_params = [{pipeline_mode = #tpu.pipeline_mode<synchronous>, transform_indices = @transform_0, window_bounds = array<i64: 2, 1>}, {transform_indices = @transform_1, window_bounds = array<i64: 2, 8, 16>}, {transform_indices = @transform_2, window_bounds = array<i64: 2, 8, 16>}, {transform_indices = @transform_3, window_bounds = array<i64: 2, 8, 16>}, {transform_indices = @transform_4, window_bounds = array<i64: 2, 8, 1>}, {transform_indices = @transform_5, window_bounds = array<i64: 2, 8, 1>}, {pipeline_mode = #tpu.pipeline_mode<synchronous>, transform_indices = @transform_6, window_bounds = array<i64: 8, 128>}]} {
    %c0_i32 = arith.constant 0 : i32
    %0 = arith.cmpi eq, %arg0, %c0_i32 : i32
    %1 = arith.extui %0 : i1 to i32
    %c0_i32_0 = arith.constant 0 : i32
    %2 = arith.cmpi ne, %1, %c0_i32_0 : i32
    scf.if %2 {
      %cst_42 = arith.constant 0.000000e+00 : f32
      %87 = vector.broadcast %cst_42 : f32 to vector<8x128xf32>
      %c0_43 = arith.constant 0 : index
      %c0_44 = arith.constant 0 : index
      %88 = vector.load %arg7[%c0_43, %c0_44] : memref<8x128xf32, #tpu.memory_space<vmem>>, vector<8x128xf32>
      tpu.vector_store %arg7[%c0_43, %c0_44], %87 {strides = array<i32>} : memref<8x128xf32, #tpu.memory_space<vmem>>, vector<8x128xf32>,
    } else {
    }
    %c8_i32 = arith.constant 8 : i32
    %3 = arith.muli %arg0, %c8_i32 : i32
    %c0 = arith.constant 0 : index
    %c0_1 = arith.constant 0 : index
    %4 = vector.load %arg1[%c0, %c0_1] : memref<2x1xi32, #tpu.memory_space<vmem>>, vector<2x1xi32>
    %5 = vector.shape_cast %4 : vector<2x1xi32> to vector<2x1x1xi32>
    %6 = tpu.iota {dimensions = array<i32: 1>} : vector<2x8x1xi32>
    %7 = vector.broadcast %3 : i32 to vector<2x8x1xi32>
    %8 = arith.addi %7, %6 : vector<2x8x1xi32>
    %9 = vector.broadcast %5 : vector<2x1x1xi32> to vector<2x8x1xi32>
    %10 = arith.cmpi slt, %8, %9 : vector<2x8x1xi32>
    %11 = arith.extui %10 : vector<2x8x1xi1> to vector<2x8x1xi32>
    %12 = arith.sitofp %11 : vector<2x8x1xi32> to vector<2x8x1xf32>
    %c0_2 = arith.constant 0 : index
    %c0_3 = arith.constant 0 : index
    %c0_4 = arith.constant 0 : index
    %13 = vector.load %arg4[%c0_2, %c0_3, %c0_4] : memref<2x8x16xf32, #tpu.memory_space<vmem>>, vector<2x8x16xf32>
    %c0_5 = arith.constant 0 : index
    %c0_6 = arith.constant 0 : index
    %c0_7 = arith.constant 0 : index
    %14 = vector.load %arg2[%c0_5, %c0_6, %c0_7] : memref<2x8x16xf32, #tpu.memory_space<vmem>>, vector<2x8x16xf32>
    %15 = arith.subf %14, %13 : vector<2x8x16xf32>
    %c0_8 = arith.constant 0 : index
    %c0_9 = arith.constant 0 : index
    %c0_10 = arith.constant 0 : index
    %16 = vector.load %arg3[%c0_8, %c0_9, %c0_10] : memref<2x8x16xf32, #tpu.memory_space<vmem>>, vector<2x8x16xf32>
    %17 = arith.subf %16, %13 : vector<2x8x16xf32>
    %18 = math.absf %15 : vector<2x8x16xf32>
    %19 = math.absf %17 : vector<2x8x16xf32>
    %20 = arith.addf %18, %19 : vector<2x8x16xf32>
    %21 = vector.broadcast %12 : vector<2x8x1xf32> to vector<2x8x16xf32>
    %22 = arith.mulf %20, %21 : vector<2x8x16xf32>
    %23 = vector.shape_cast %22 : vector<2x8x16xf32> to vector<1x2x8x16xf32>
    %cst = arith.constant dense<0.000000e+00> : vector<1xf32>
    %24 = vector.multi_reduction <add>, %23, %cst [1, 2, 3] : vector<1x2x8x16xf32> to vector<1xf32>
    %25 = vector.shape_cast %24 : vector<1xf32> to vector<1x1x1x1xf32>
    %26 = vector.extract %25[0, 0, 0, 0] : f32 from vector<1x1x1x1xf32>
    %27 = arith.mulf %15, %15 : vector<2x8x16xf32>
    %28 = arith.mulf %17, %17 : vector<2x8x16xf32>
    %29 = arith.addf %27, %28 : vector<2x8x16xf32>
    %30 = vector.broadcast %12 : vector<2x8x1xf32> to vector<2x8x16xf32>
    %31 = arith.mulf %29, %30 : vector<2x8x16xf32>
    %32 = vector.shape_cast %31 : vector<2x8x16xf32> to vector<1x2x8x16xf32>
    %cst_11 = arith.constant dense<0.000000e+00> : vector<1xf32>
    %33 = vector.multi_reduction <add>, %32, %cst_11 [1, 2, 3] : vector<1x2x8x16xf32> to vector<1xf32>
    %34 = vector.shape_cast %33 : vector<1xf32> to vector<1x1x1x1xf32>
    %35 = vector.extract %34[0, 0, 0, 0] : f32 from vector<1x1x1x1xf32>
    %c0_12 = arith.constant 0 : index
    %c0_13 = arith.constant 0 : index
    %c0_14 = arith.constant 0 : index
    %36 = vector.load %arg5[%c0_12, %c0_13, %c0_14] : memref<2x8x1xf32, #tpu.memory_space<vmem>>, vector<2x8x1xf32>
    %c0_15 = arith.constant 0 : index
    %c0_16 = arith.constant 0 : index
    %c0_17 = arith.constant 0 : index
    %37 = vector.load %arg6[%c0_15, %c0_16, %c0_17] : memref<2x8x1xf32, #tpu.memory_space<vmem>>, vector<2x8x1xf32>
    %cst_18 = arith.constant 0.000000e+00 : f32
    %38 = vector.broadcast %cst_18 : f32 to vector<2x8x1xf32>
    %39 = arith.subf %38, %36 : vector<2x8x1xf32>
    %cst_19 = arith.constant 0.000000e+00 : f32
    %40 = vector.broadcast %cst_19 : f32 to vector<2x8x1xf32>
    %41 = arith.maximumf %39, %40 : vector<2x8x1xf32>
    %42 = math.absf %36 : vector<2x8x1xf32>
    %cst_20 = arith.constant 0.000000e+00 : f32
    %43 = vector.broadcast %cst_20 : f32 to vector<2x8x1xf32>
    %44 = arith.subf %43, %42 : vector<2x8x1xf32>
    %45 = math.exp %44 : vector<2x8x1xf32>
    %cst_21 = arith.constant 1.000000e+00 : f32
    %46 = vector.broadcast %cst_21 : f32 to vector<2x8x1xf32>
    %47 = arith.addf %46, %45 : vector<2x8x1xf32>
    %48 = math.log %47 : vector<2x8x1xf32>
    %49 = arith.addf %41, %48 : vector<2x8x1xf32>
    %cst_22 = arith.constant 1.000000e+00 : f32
    %50 = vector.broadcast %cst_22 : f32 to vector<2x8x1xf32>
    %51 = arith.subf %50, %37 : vector<2x8x1xf32>
    %52 = arith.mulf %51, %36 : vector<2x8x1xf32>
    %cst_23 = arith.constant 1.900000e+01 : f32
    %53 = vector.broadcast %cst_23 : f32 to vector<2x8x1xf32>
    %54 = arith.mulf %53, %37 : vector<2x8x1xf32>
    %cst_24 = arith.constant 1.000000e+00 : f32
    %55 = vector.broadcast %cst_24 : f32 to vector<2x8x1xf32>
    %56 = arith.addf %55, %54 : vector<2x8x1xf32>
    %57 = arith.mulf %56, %49 : vector<2x8x1xf32>
    %58 = arith.addf %52, %57 : vector<2x8x1xf32>
    %59 = arith.mulf %58, %12 : vector<2x8x1xf32>
    %60 = vector.shape_cast %59 : vector<2x8x1xf32> to vector<1x2x8x1xf32>
    %cst_25 = arith.constant dense<0.000000e+00> : vector<1xf32>
    %61 = vector.multi_reduction <add>, %60, %cst_25 [1, 2, 3] : vector<1x2x8x1xf32> to vector<1xf32>
    %62 = vector.shape_cast %61 : vector<1xf32> to vector<1x1x1x1xf32>
    %63 = vector.extract %62[0, 0, 0, 0] : f32 from vector<1x1x1x1xf32>
    %64 = vector.shape_cast %12 : vector<2x8x1xf32> to vector<1x2x8x1xf32>
    %cst_26 = arith.constant dense<0.000000e+00> : vector<1xf32>
    %65 = vector.multi_reduction <add>, %64, %cst_26 [1, 2, 3] : vector<1x2x8x1xf32> to vector<1xf32>
    %66 = vector.shape_cast %65 : vector<1xf32> to vector<1x1x1x1xf32>
    %67 = vector.extract %66[0, 0, 0, 0] : f32 from vector<1x1x1x1xf32>
    %c0_27 = arith.constant 0 : index
    %c0_28 = arith.constant 0 : index
    %68 = vector.load %arg7[%c0_27, %c0_28] : memref<8x128xf32, #tpu.memory_space<vmem>>, vector<1x128xf32>
    %69 = vector.broadcast %26 : f32 to vector<1x128xf32>
    %70 = arith.addf %68, %69 : vector<1x128xf32>
    %c0_29 = arith.constant 0 : index
    %c0_30 = arith.constant 0 : index
    %71 = vector.load %arg7[%c0_29, %c0_30] : memref<8x128xf32, #tpu.memory_space<vmem>>, vector<1x128xf32>
    tpu.vector_store %arg7[%c0_29, %c0_30], %70 {strides = array<i32>} : memref<8x128xf32, #tpu.memory_space<vmem>>, vector<1x128xf32>,
    %c1 = arith.constant 1 : index
    %c0_31 = arith.constant 0 : index
    %72 = vector.load %arg7[%c1, %c0_31] : memref<8x128xf32, #tpu.memory_space<vmem>>, vector<1x128xf32>
    %73 = vector.broadcast %35 : f32 to vector<1x128xf32>
    %74 = arith.addf %72, %73 : vector<1x128xf32>
    %c1_32 = arith.constant 1 : index
    %c0_33 = arith.constant 0 : index
    %75 = vector.load %arg7[%c1_32, %c0_33] : memref<8x128xf32, #tpu.memory_space<vmem>>, vector<1x128xf32>
    tpu.vector_store %arg7[%c1_32, %c0_33], %74 {strides = array<i32>} : memref<8x128xf32, #tpu.memory_space<vmem>>, vector<1x128xf32>,
    %c2 = arith.constant 2 : index
    %c0_34 = arith.constant 0 : index
    %76 = vector.load %arg7[%c2, %c0_34] : memref<8x128xf32, #tpu.memory_space<vmem>>, vector<1x128xf32>
    %77 = vector.broadcast %63 : f32 to vector<1x128xf32>
    %78 = arith.addf %76, %77 : vector<1x128xf32>
    %c2_35 = arith.constant 2 : index
    %c0_36 = arith.constant 0 : index
    %79 = vector.load %arg7[%c2_35, %c0_36] : memref<8x128xf32, #tpu.memory_space<vmem>>, vector<1x128xf32>
    tpu.vector_store %arg7[%c2_35, %c0_36], %78 {strides = array<i32>} : memref<8x128xf32, #tpu.memory_space<vmem>>, vector<1x128xf32>,
    %c3 = arith.constant 3 : index
    %c0_37 = arith.constant 0 : index
    %80 = vector.load %arg7[%c3, %c0_37] : memref<8x128xf32, #tpu.memory_space<vmem>>, vector<1x128xf32>
    %81 = vector.broadcast %67 : f32 to vector<1x128xf32>
    %82 = arith.addf %80, %81 : vector<1x128xf32>
    %c3_38 = arith.constant 3 : index
    %c0_39 = arith.constant 0 : index
    %83 = vector.load %arg7[%c3_38, %c0_39] : memref<8x128xf32, #tpu.memory_space<vmem>>, vector<1x128xf32>
    tpu.vector_store %arg7[%c3_38, %c0_39], %82 {strides = array<i32>} : memref<8x128xf32, #tpu.memory_space<vmem>>, vector<1x128xf32>,
    %c0_i32_40 = arith.constant 0 : i32
    %84 = arith.cmpi eq, %arg0, %c0_i32_40 : i32
    %85 = arith.extui %84 : i1 to i32
    %c0_i32_41 = arith.constant 0 : i32
    %86 = arith.cmpi ne, %85, %c0_i32_41 : i32
    scf.if %86 {
      %c3_42 = arith.constant 3 : index
      %c0_43 = arith.constant 0 : index
      %87 = vector.load %arg7[%c3_42, %c0_43] : memref<8x128xf32, #tpu.memory_space<vmem>>, vector<1x1xf32>
      %cst_44 = arith.constant 1.600000e+01 : f32
      %88 = vector.broadcast %cst_44 : f32 to vector<1x1xf32>
      %89 = arith.mulf %87, %88 : vector<1x1xf32>
      %c0_45 = arith.constant 0 : index
      %c0_46 = arith.constant 0 : index
      %90 = vector.load %arg7[%c0_45, %c0_46] : memref<8x128xf32, #tpu.memory_space<vmem>>, vector<1x128xf32>
      %91 = vector.broadcast %89 : vector<1x1xf32> to vector<1x128xf32>
      %92 = arith.divf %90, %91 : vector<1x128xf32>
      %c0_47 = arith.constant 0 : index
      %c0_48 = arith.constant 0 : index
      %93 = vector.load %arg7[%c0_47, %c0_48] : memref<8x128xf32, #tpu.memory_space<vmem>>, vector<1x128xf32>
      tpu.vector_store %arg7[%c0_47, %c0_48], %92 {strides = array<i32>} : memref<8x128xf32, #tpu.memory_space<vmem>>, vector<1x128xf32>,
      %c1_49 = arith.constant 1 : index
      %c0_50 = arith.constant 0 : index
      %94 = vector.load %arg7[%c1_49, %c0_50] : memref<8x128xf32, #tpu.memory_space<vmem>>, vector<1x128xf32>
      %95 = vector.broadcast %89 : vector<1x1xf32> to vector<1x128xf32>
      %96 = arith.divf %94, %95 : vector<1x128xf32>
      %c1_51 = arith.constant 1 : index
      %c0_52 = arith.constant 0 : index
      %97 = vector.load %arg7[%c1_51, %c0_52] : memref<8x128xf32, #tpu.memory_space<vmem>>, vector<1x128xf32>
      tpu.vector_store %arg7[%c1_51, %c0_52], %96 {strides = array<i32>} : memref<8x128xf32, #tpu.memory_space<vmem>>, vector<1x128xf32>,
      %c2_53 = arith.constant 2 : index
      %c0_54 = arith.constant 0 : index
      %98 = vector.load %arg7[%c2_53, %c0_54] : memref<8x128xf32, #tpu.memory_space<vmem>>, vector<1x128xf32>
      %99 = vector.broadcast %87 : vector<1x1xf32> to vector<1x128xf32>
      %100 = arith.divf %98, %99 : vector<1x128xf32>
      %c2_55 = arith.constant 2 : index
      %c0_56 = arith.constant 0 : index
      %101 = vector.load %arg7[%c2_55, %c0_56] : memref<8x128xf32, #tpu.memory_space<vmem>>, vector<1x128xf32>
      tpu.vector_store %arg7[%c2_55, %c0_56], %100 {strides = array<i32>} : memref<8x128xf32, #tpu.memory_space<vmem>>, vector<1x128xf32>,
    } else {
    }
    return
  }
  func.func @transform_0(%arg0: i32) -> (i32, i32) {
    %c0_i32 = arith.constant 0 : i32
    %c0_i32_0 = arith.constant 0 : i32
    %c0_i32_1 = arith.constant 0 : i32
    return %c0_i32, %c0_i32_0 : i32, i32
  }
  func.func @transform_1(%arg0: i32) -> (i32, i32, i32) {
    %c0_i32 = arith.constant 0 : i32
    %c0_i32_0 = arith.constant 0 : i32
    %c0_i32_1 = arith.constant 0 : i32
    return %c0_i32, %arg0, %c0_i32_0 : i32, i32, i32
  }
  func.func @transform_2(%arg0: i32) -> (i32, i32, i32) {
    %c0_i32 = arith.constant 0 : i32
    %c0_i32_0 = arith.constant 0 : i32
    %c0_i32_1 = arith.constant 0 : i32
    return %c0_i32, %arg0, %c0_i32_0 : i32, i32, i32
  }
  func.func @transform_3(%arg0: i32) -> (i32, i32, i32) {
    %c0_i32 = arith.constant 0 : i32
    %c0_i32_0 = arith.constant 0 : i32
    %c0_i32_1 = arith.constant 0 : i32
    return %c0_i32, %arg0, %c0_i32_0 : i32, i32, i32
  }
  func.func @transform_4(%arg0: i32) -> (i32, i32, i32) {
    %c0_i32 = arith.constant 0 : i32
    %c0_i32_0 = arith.constant 0 : i32
    %c0_i32_1 = arith.constant 0 : i32
    return %c0_i32, %arg0, %c0_i32_0 : i32, i32, i32
  }
  func.func @transform_5(%arg0: i32) -> (i32, i32, i32) {
    %c0_i32 = arith.constant 0 : i32
    %c0_i32_0 = arith.constant 0 : i32
    %c0_i32_1 = arith.constant 0 : i32
    return %c0_i32, %arg0, %c0_i32_0 : i32, i32, i32
  }
  func.func @transform_6(%arg0: i32) -> (i32, i32) {
    %c0_i32 = arith.constant 0 : i32
    %c0_i32_0 = arith.constant 0 : i32
    %c0_i32_1 = arith.constant 0 : i32
    return %c0_i32, %c0_i32_0 : i32, i32
  }
}

</mosaic_0001>

<bundles_post_ra>
// kernel: tpu_custom_call.1
= control target key start
LH: loop header
LB: loop body
LE: loop exit
PB: predicated region body
PF: predicated region fallthrough
CT: control target
= control target key end

     0   :  { %11 = vsyncpa [#allocation3], 0  ;;  %s694_s0 = inlined_call_operand.hbm [shape: s32[2,1], index: 0, kind: input, shape index: {}]   ;;  %s695_s1 = inlined_call_operand.hbm [shape: f32[2,8,16], index: 1, kind: input, shape index: {}]   ;;  %s696_s2 = inlined_call_operand.hbm [shape: f32[2,8,16], index: 2, kind: input, shape index: {}]   ;;  %s697_s3 = inlined_call_operand.hbm [shape: f32[2,8,16], index: 3, kind: input, shape index: {}]   ;;  %s698_s4 = inlined_call_operand.hbm [shape: f32[2,8,1], index: 4, kind: input, shape index: {}]   ;;  %s699_s5 = inlined_call_operand.hbm [shape: f32[2,8,1], index: 5, kind: input, shape index: {}]   ;;  %s700_s6 = inlined_call_operand.hbm [shape: f32[8,128], index: 6, kind: output, shape index: {}]  }
   0x1   :  { %12 = vsyncpa [#allocation6], 0 }
   0x2   :  { %13 = vsyncpa [#allocation9], 0 }
   0x3   :  { %14 = vsyncpa [#allocation12], 0 }
   0x4   :  { %15 = vsyncpa [#allocation4], 0  ;;  %s541_s21 = smov [#allocation5]   ;;  %s377_s25 = scalar_lea.hbm %s695_s1, 256 }
   0x5   :  { %s31_s22 = sshll.u32 %s541_s21, 4  ;;  %p378_p0 = scmp.ne.s32.totalorder %s695_s1, %s377_s25  ;;  %s32_s22 = int_to_ptr.vmem [resolvable:$true] %s31_s22 }
   0x6   :  { %p381_p1 = scmp.lt.u32.totalorder %s377_s25, %s695_s1 }
   0x8   :  { %p383_p2 = pnand %p381_p1, %p378_p0 }
   0xa   :  { %386 = shalt.err (!%p383_p2)
}
   0xb   :  { %s387_s30 = scalar_lea.vmem %s32_s22, 256  ;;  %p392_p4 = scmp.lt.s32.totalorder %s32_s22, %s32_s22 }
   0xc   :  { %p388_p3 = scmp.ne.s32.totalorder %s32_s22, %s387_s30  ;;  %p393_p5 = scmp.lt.s32.totalorder %s387_s30, %s387_s30 }
   0xe   :  { %p394_p6 = por %p393_p5, %p392_p4 }
  0x10   :  { %p395_p7 = pnand %p394_p6, %p388_p3 }
  0x12   :  { %398 = shalt.err (!%p395_p7)
}
  0x13   :  { %s542_s7 = smov 128   ;;  %s543_s8 = smov 8  }
  0x14   :  { %37 = dma.hbm_to_vmem [thread:$0]  %s695_s1, 256, %s32_s22, [#allocation6], %s542_s7, %s542_s7, %s543_s8  }
  0x15   :  { %s544_s11 = smov [#allocation8]   ;;  %s545_s13 = smov [#allocation2]  }
  0x16   :  { %s55_s12 = sshll.u32 %s544_s11, 4  ;;  %s22_s14 = sshll.u32 %s545_s13, 4  ;;  %s56_s12 = int_to_ptr.vmem [resolvable:$true] %s55_s12  ;;  %s23_s14 = int_to_ptr.vmem [resolvable:$true] %s22_s14 }
  0x17   :  { %s399_s17 = scalar_lea.hbm %s697_s3, 256 }
  0x18   :  { %p400_p8 = scmp.ne.s32.totalorder %s697_s3, %s399_s17  ;;  %p403_p9 = scmp.lt.u32.totalorder %s399_s17, %s697_s3 }
  0x1a   :  { %p405_p10 = pnand %p403_p9, %p400_p8 }
  0x1c   :  { %408 = shalt.err (!%p405_p10)
}
  0x1d   :  { %s409_s1 = scalar_lea.vmem %s56_s12, 256  ;;  %p414_p12 = scmp.lt.s32.totalorder %s56_s12, %s56_s12 }
  0x1e   :  { %p410_p11 = scmp.ne.s32.totalorder %s56_s12, %s409_s1  ;;  %p415_p13 = scmp.lt.s32.totalorder %s409_s1, %s409_s1 }
  0x20   :  { %p416_p0 = por %p415_p13, %p414_p12 }
  0x22   :  { %p417_p1 = pnand %p416_p0, %p410_p11 }
  0x24   :  { %420 = shalt.err (!%p417_p1)
}
  0x25   :  { %61 = dma.hbm_to_vmem [thread:$0]  %s697_s3, 256, %s56_s12, [#allocation9], %s542_s7, %s542_s7, %s543_s8  }
  0x26   :  { %s421_s26 = scalar_lea.hbm %s694_s0, 32 }
  0x27   :  { %p422_p2 = scmp.ne.s32.totalorder %s694_s0, %s421_s26  ;;  %p425_p3 = scmp.lt.u32.totalorder %s421_s26, %s694_s0 }
  0x29   :  { %p427_p4 = pnand %p425_p3, %p422_p2 }
  0x2b   :  { %430 = shalt.err (!%p427_p4)
}
  0x2c   :  { %s431_s9 = scalar_lea.vmem %s23_s14, 32  ;;  %p436_p6 = scmp.lt.s32.totalorder %s23_s14, %s23_s14 }
  0x2d   :  { %p432_p5 = scmp.ne.s32.totalorder %s23_s14, %s431_s9  ;;  %p437_p7 = scmp.lt.s32.totalorder %s431_s9, %s431_s9 }
  0x2f   :  { %p438_p8 = por %p437_p7, %p436_p6 }
  0x31   :  { %p439_p9 = pnand %p438_p8, %p432_p5 }
  0x33   :  { %442 = shalt.err (!%p439_p9)
}
  0x34   :  { %25 = dma.hbm_to_vmem [thread:$0]  %s694_s0, 32, %s23_s14, [#allocation3]  }
  0x35   :  { %s546_s11 = smov [#allocation7]   ;;  %s547_s13 = smov [#allocation10]  }
  0x36   :  { %s43_s12 = sshll.u32 %s546_s11, 4  ;;  %s67_s15 = sshll.u32 %s547_s13, 4  ;;  %s44_s12 = int_to_ptr.vmem [resolvable:$true] %s43_s12  ;;  %s68_s15 = int_to_ptr.vmem [resolvable:$true] %s67_s15 }
  0x37   :  { %s443_s18 = scalar_lea.hbm %s696_s2, 256 }
  0x38   :  { %p444_p10 = scmp.ne.s32.totalorder %s696_s2, %s443_s18  ;;  %p447_p11 = scmp.lt.u32.totalorder %s443_s18, %s696_s2 }
  0x3a   :  { %p449_p12 = pnand %p447_p11, %p444_p10 }
  0x3c   :  { %452 = shalt.err (!%p449_p12)
}
  0x3d   :  { %s453_s0 = scalar_lea.vmem %s44_s12, 256  ;;  %p458_p0 = scmp.lt.s32.totalorder %s44_s12, %s44_s12 }
  0x3e   :  { %p454_p13 = scmp.ne.s32.totalorder %s44_s12, %s453_s0  ;;  %p459_p1 = scmp.lt.s32.totalorder %s453_s0, %s453_s0 }
  0x40   :  { %p460_p2 = por %p459_p1, %p458_p0 }
  0x42   :  { %p461_p3 = pnand %p460_p2, %p454_p13 }
  0x44   :  { %464 = shalt.err (!%p461_p3)
}
  0x45   :  { %49 = dma.hbm_to_vmem [thread:$0]  %s696_s2, 256, %s44_s12, [#allocation6], %s542_s7, %s542_s7, %s543_s8  }
  0x46   :  { %s465_s25 = scalar_lea.hbm %s698_s4, 256 }
  0x47   :  { %p466_p4 = scmp.ne.s32.totalorder %s698_s4, %s465_s25  ;;  %p469_p5 = scmp.lt.u32.totalorder %s465_s25, %s698_s4 }
  0x49   :  { %p471_p6 = pnand %p469_p5, %p466_p4 }
  0x4b   :  { %474 = shalt.err (!%p471_p6)
}
  0x4c   :  { %s475_s30 = scalar_lea.vmem %s68_s15, 256  ;;  %p480_p8 = scmp.lt.s32.totalorder %s68_s15, %s68_s15 }
  0x4d   :  { %p476_p7 = scmp.ne.s32.totalorder %s68_s15, %s475_s30  ;;  %p481_p9 = scmp.lt.s32.totalorder %s475_s30, %s475_s30 }
  0x4f   :  { %p482_p10 = por %p481_p9, %p480_p8 }
  0x51   :  { %p483_p11 = pnand %p482_p10, %p476_p7 }
  0x53   :  { %486 = shalt.err (!%p483_p11)
}
  0x54   :  { %73 = dma.hbm_to_vmem [thread:$0]  %s698_s4, 256, %s68_s15, [#allocation9], %s542_s7, %s542_s7, %s543_s8  }
  0x55   :  { %s548_s3 = smov [#allocation11]   ;;  %s487_s13 = scalar_lea.hbm %s699_s5, 256 }
  0x56   :  { %s79_s10 = sshll.u32 %s548_s3, 4  ;;  %p488_p12 = scmp.ne.s32.totalorder %s699_s5, %s487_s13  ;;  %s80_s10 = int_to_ptr.vmem [resolvable:$true] %s79_s10 }
  0x57   :  { %p491_p13 = scmp.lt.u32.totalorder %s487_s13, %s699_s5 }
  0x59   :  { %p493_p0 = pnand %p491_p13, %p488_p12 }
  0x5b   :  { %496 = shalt.err (!%p493_p0)
}
  0x5c   :  { %s497_s20 = scalar_lea.vmem %s80_s10, 256  ;;  %p502_p2 = scmp.lt.s32.totalorder %s80_s10, %s80_s10 }
  0x5d   :  { %p498_p1 = scmp.ne.s32.totalorder %s80_s10, %s497_s20  ;;  %p503_p3 = scmp.lt.s32.totalorder %s497_s20, %s497_s20 }
  0x5f   :  { %p504_p4 = por %p503_p3, %p502_p2 }
  0x61   :  { %p505_p5 = pnand %p504_p4, %p498_p1 }
  0x63   :  { %508 = shalt.err (!%p505_p5)
}
  0x64   :  { %85 = dma.hbm_to_vmem [thread:$0]  %s699_s5, 256, %s80_s10, [#allocation12], %s542_s7, %s542_s7, %s543_s8  }
  0x65   :  { %531 = dma.done.wait [#allocation3], 32  }
  0x66   :  { %532 = vsyncadd [#allocation3], 4294967264 }
  0x67   :  { %533 = dma.done.wait [#allocation6], 512  }
  0x68   :  { %534 = vsyncadd [#allocation6], 4294966784 }
  0x69   :  { %535 = dma.done.wait [#allocation9], 512  }
  0x6a   :  { %536 = vsyncadd [#allocation9], 4294966784 }
  0x6b   :  { %537 = dma.done.wait [#allocation12], 256  }
  0x6c   :  { %538 = vsyncadd [#allocation12], 4294967040  ;;  %v122_v0 = vlaneseq  ;;  %v549_v1 = vmov 0   ;;  %v550_v2 = vmov 1966171168   ;;  %v551_v4 = vmov 0.0  }
  0x6d   :  { %358 = vset.pattern.permute.xlu0 %v549_v1  ;;  %v120_v3 = vunpack.c.l.s4 %v550_v2  ;;  %108 = vst [vmem:[#allocation13] sm:$0xff] %v551_v4  ;;  %364 = vset.pattern.permute.xlu1 %v549_v1  ;;  %v335_v9 = vld.sshfl [vmem:[#allocation2] sm:$0x11 pattern:$0x75316420]  ;;  %v212_v10 = vld [vmem:[#allocation10] sm:$0xff] }
  0x6e   :  { %v123_v5 = vshrl.u32 %v122_v0, 7  ;;  %v213_v11 = vld [vmem:[#allocation10 + $0x8] sm:$0xff]  ;;  %v118_v12 = vcombine.high %v335_v9, %v335_v9  ;;  %v220_v14 = vand.u32 2147483647, %v212_v10  ;;  %vm250_vm2 = vcmask 7168   ;;  %v214_v33 = vld [vmem:[#allocation11] sm:$0xff] }
  0x6f   :  { %v121_v6 = vunpack.c.0.s8 %v120_v3  ;;  %v221_v15 = vand.u32 2147483647, %v213_v11  ;;  %v215_v34 = vld [vmem:[#allocation11 + $0x8] sm:$0xff]  ;;  %v216_v35 = vsub.f32 0.0, %v212_v10  ;;  %v217_v36 = vsub.f32 0.0, %v213_v11  ;;  %v151_v62 = vld [vmem:[#allocation8] sm:$0xff] }
  0x70   :  { %v139_v8 = vsub.s32 0, %v123_v5  ;;  %v222_v18 = vsub.f32 0.0, %v220_v14  ;;  %v240_v37 = vmul.f32 19.0, %v214_v33  ;;  %v241_v38 = vmul.f32 19.0, %v215_v34  ;;  %v152_v63 = vld [vmem:[#allocation8 + $0x8] sm:$0xff]  ;;  %v153_v0 = vld [vmem:[#allocation5] sm:$0xff] }
  0x71   :  { %v124_v7 = vsub.s32 %v121_v6, %v123_v5  ;;  %v223_v19 = vsub.f32 0.0, %v221_v15  ;;  %v218_v39 = vmax.f32 %v216_v35, 0.0  ;;  %v236_v40 = vsub.f32 1.0, %v214_v33  ;;  %v154_v1 = vld [vmem:[#allocation5 + $0x8] sm:$0xff]  ;;  %v157_v2 = vld [vmem:[#allocation7] sm:$0xff]  ;;  %v158_v3 = vld [vmem:[#allocation7 + $0x8] sm:$0xff] }
  0x72   :  { %v224_v22 = vmul.f32 1.442695, %v222_v18  ;;  %v219_v42 = vmax.f32 %v217_v36, 0.0  ;;  %v237_v43 = vsub.f32 1.0, %v215_v34  ;;  %v242_v46 = vadd.f32 1.0, %v240_v37  ;;  %s552_s1 = smov [#allocation13]  }
  0x73   :  { %v125_v13 = vrot.slane %v335_v9, %v124_v7  ;;  %v132_v16 = vrot.slane %v118_v12, %v124_v7  ;;  %v226_v23 = vmul.f32 1.442695, %v223_v19  ;;  %v243_v48 = vadd.f32 1.0, %v241_v38  ;;  %s323_s0 = sshll.u32 %s552_s1, 4  ;;  %s324_s0 = int_to_ptr.vmem [resolvable:$true] %s323_s0 }
  0x74   :  { %365 = vpow2.f32 %v224_v22  ;;  %v238_v50 = vmul.f32 %v236_v40, %v212_v10  ;;  %v239_v52 = vmul.f32 %v237_v43, %v213_v11  ;;  %v159_v6 = vsub.f32 %v157_v2, %v151_v62  ;;  %s509_s14 = scalar_lea.vmem %s324_s0, 128  ;;  %p514_p7 = scmp.lt.s32.totalorder %s324_s0, %s324_s0 }
  0x75   :  { %v140_v17 = vrot.slane %v125_v13, %v139_v8  ;;  %v144_v20 = vrot.slane %v132_v16, %v139_v8  ;;  %367 = vpow2.f32 %v226_v23  ;;  %v160_v7 = vsub.f32 %v158_v3, %v152_v63  ;;  %p510_p6 = scmp.ne.s32.totalorder %s324_s0, %s509_s14  ;;  %p515_p8 = scmp.lt.s32.totalorder %s509_s14, %s509_s14 }
  0x76   :  { %v163_v10 = vand.u32 2147483647, %v159_v6  ;;  %v194_v14 = vmul.f32 %v159_v6, %v159_v6  ;;  %vm179_vm3 = vcmask 130048  }
  0x77   :  { %vm145_vm0 = vcmp.lt.s32.totalorder %v123_v5, %v140_v17  ;;  %vm146_vm1 = vcmp.lt.s32.totalorder %v123_v5, %v144_v20  ;;  %v156_v5 = vsub.f32 %v154_v1, %v152_v63  ;;  %v164_v11 = vand.u32 2147483647, %v160_v7  ;;  %p516_p9 = por %p515_p8, %p514_p7 }
  0x78   :  { %v336_v21 = vsel %vm145_vm0, 1.0, %v551_v4  ;;  %v337_v24 = vsel %vm146_vm1, 1.0, %v551_v4  ;;  %v155_v4 = vsub.f32 %v153_v0, %v151_v62  ;;  %v195_v15 = vmul.f32 %v160_v7, %v160_v7  ;;  %v279_v62 = vld [vmem:[#allocation13 + $0x1] sm:$0x1]  ;;  %v283_v0 = vld [vmem:[#allocation13 + $0x2] sm:$0x1] }
  0x79   :  { %v359_v25 = vpack.i.bf16 %v337_v24, %v336_v21  ;;  %v263_v27 = vsel %vm250_vm2, %v336_v21, 0.0  ;;  %v264_v28 = vsel %vm250_vm2, %v337_v24, 0.0  ;;  %v162_v9 = vand.u32 2147483647, %v156_v5  ;;  %p517_p10 = pnand %p516_p9, %p510_p6 }
  0x7a   :  { %v677_v31 = vadd.f32 %v264_v28, %v263_v27  ;;  %v161_v8 = vand.u32 2147483647, %v155_v4  ;;  %v192_v12 = vmul.f32 %v155_v4, %v155_v4  ;;  %v193_v13 = vmul.f32 %v156_v5, %v156_v5  ;;  %v287_v5 = vld [vmem:[#allocation13 + $0x3] sm:$0x1] }
  0x7b   :  { %360 = vperm.xlu0 %358, %v359_v25   ;;  %v166_v17 = vadd.f32 %v164_v11, %v162_v9 }
  0x7c   :  { %v165_v16 = vadd.f32 %v163_v10, %v161_v8  ;;  %v196_v18 = vadd.f32 %v194_v14, %v192_v12  ;;  %v197_v19 = vadd.f32 %v195_v15, %v193_v13 }
  0x7e   :  { %v366_v26 = vpop.eup %365 }
  0x7f   :  { %v368_v29 = vpop.eup %367  ;;  %v228_v30 = vadd.f32 1.0, %v366_v26 }
  0x80   :  { %v229_v32 = vadd.f32 1.0, %v368_v29 }
  0x81   :  { %369 = vlog2.f32 %v228_v30 }
  0x82   :  { %371 = vlog2.f32 %v229_v32 }
  0x8b   :  { %v370_v41 = vpop.eup %369 }
  0x8c   :  { %v372_v44 = vpop.eup %371  ;;  %v231_v45 = vmul.f32 0.6931472, %v370_v41 }
  0x8d   :  { %v233_v47 = vmul.f32 0.6931472, %v372_v44 }
  0x8e   :  { %v234_v49 = vadd.f32 %v231_v45, %v218_v39 }
  0x8f   :  { %v235_v51 = vadd.f32 %v233_v47, %v219_v42 }
  0x90   :  { %v244_v53 = vmul.f32 %v242_v46, %v234_v49 }
  0x91   :  { %v245_v54 = vmul.f32 %v243_v48, %v235_v51 }
  0x92   :  { %v246_v55 = vadd.f32 %v244_v53, %v238_v50 }
  0x93   :  { %v247_v56 = vadd.f32 %v245_v54, %v239_v52 }
  0x94   :  { %v248_v57 = vmul.f32 %v336_v21, %v246_v55 }
  0x95   :  { %v249_v58 = vmul.f32 %v337_v24, %v247_v56 }
  0x96   :  { %v251_v59 = vsel %vm250_vm2, %v248_v57, 0.0 }
  0x97   :  { %v252_v60 = vsel %vm250_vm2, %v249_v58, 0.0 }
  0x98   :  { %v253_v61 = vadd.f32 %v252_v60, %v251_v59 }
  0x9a   :  { %254 = vadd.xlane.f32.xlu1 %v253_v61  ;;  %v275_v61 = vld [vmem:[#allocation13] sm:$0x1] }
  0xfa   :  { %v361_v20 = vpop.permute.xlu0 %360 }
  0xfb   :  { %v363_v21 = vunpack.i.h.bf16 %v361_v20  ;;  %v362_v22 = vunpack.i.l.bf16 %v361_v20 }
  0xfd   :  { %v178_v23 = vmul.f32 %v363_v21, %v166_v17  ;;  %v199_v24 = vmul.f32 %v363_v21, %v197_v19  ;;  %v177_v25 = vmul.f32 %v362_v22, %v165_v16  ;;  %v198_v26 = vmul.f32 %v362_v22, %v196_v18 }
  0xff   :  { %v180_v27 = vsel %vm179_vm3, %v177_v25, 0.0  ;;  %v181_v28 = vsel %vm179_vm3, %v178_v23, 0.0  ;;  %v200_v29 = vsel %vm179_vm3, %v198_v26, 0.0  ;;  %v201_v30 = vsel %vm179_vm3, %v199_v24, 0.0 }
 0x100   :  { %v182_v32 = vadd.f32 %v181_v28, %v180_v27  ;;  %v202_v33 = vadd.f32 %v201_v30, %v200_v29 }
 0x102   :  { %183 = vadd.xlane.f32.xlu0 %v182_v32  ;;  %203 = vadd.xlane.f32.xlu1 %v202_v33 }
 0x106   :  { %266 = vadd.xlane.f32.xlu1 %v677_v31 }
 0x127   :  { %v255_v34 = vpop.xlane.xlu1 %254 }
 0x128   :  { %v256_v35 = vrot.slane %v255_v34, 4 }
 0x12a   :  { %v257_v36 = vadd.f32 %v256_v35, %v255_v34 }
 0x12c   :  { %v258_v39 = vrot.slane %v257_v36, 2 }
 0x12e   :  { %v259_v48 = vadd.f32 %v258_v39, %v257_v36 }
 0x130   :  { %v260_v54 = vrot.slane %v259_v48, 1 }
 0x132   :  { %v261_v58 = vadd.f32 %v260_v54, %v259_v48 }
 0x18f   :  { %v184_v37 = vpop.xlane.xlu0 %183  ;;  %v204_v38 = vpop.xlane.xlu1 %203 }
 0x190   :  { %v185_v40 = vrot.slane %v184_v37, 4  ;;  %v205_v41 = vrot.slane %v204_v38, 4 }
 0x192   :  { %v186_v42 = vadd.f32 %v185_v40, %v184_v37  ;;  %v206_v43 = vadd.f32 %v205_v41, %v204_v38 }
 0x193   :  { %v267_v44 = vpop.xlane.xlu1 %266 }
 0x194   :  { %v187_v45 = vrot.slane %v186_v42, 2  ;;  %v207_v46 = vrot.slane %v206_v43, 2  ;;  %v268_v47 = vrot.slane %v267_v44, 4 }
 0x196   :  { %v269_v49 = vadd.f32 %v268_v47, %v267_v44  ;;  %v188_v50 = vadd.f32 %v187_v45, %v186_v42  ;;  %v208_v51 = vadd.f32 %v207_v46, %v206_v43 }
 0x198   :  { %v270_v52 = vrot.slane %v269_v49, 2  ;;  %v189_v31 = vrot.slane %v188_v50, 1  ;;  %v209_v53 = vrot.slane %v208_v51, 1 }
 0x19a   :  { %v190_v55 = vadd.f32 %v189_v31, %v188_v50  ;;  %v210_v56 = vadd.f32 %v209_v53, %v208_v51  ;;  %v271_v57 = vadd.f32 %v270_v52, %v269_v49 }
 0x19c   :  { %338 = vpush %v190_v55  ;;  %v272_v59 = vrot.slane %v271_v57, 1 }
 0x19d   :  { %340 = vpush %v210_v56 }
 0x19e   :  { %342 = vpush %v261_v58  ;;  %v273_v60 = vadd.f32 %v272_v59, %v271_v57 }
 0x1a0   :  { %344 = vpush %v273_v60 }
 0x1cd   :  { %s339_s5 = spop %338 }
 0x1ce   :  { %v276_v63 = vstv %s339_s5  ;;  %s341_s7 = spop %340 }
 0x1cf   :  { %v277_v1 = vadd.f32 %v276_v63, %v275_v61  ;;  %v280_v2 = vstv %s341_s7  ;;  %s343_s8 = spop %342 }
 0x1d0   :  { %v281_v3 = vadd.f32 %v280_v2, %v279_v62  ;;  %v284_v4 = vstv %s343_s8 }
 0x1d1   :  { %278 = vst [vmem:[#allocation13] sm:$0x1] %v277_v1  ;;  %v285_v6 = vadd.f32 %v284_v4, %v283_v0  ;;  %s345_s21 = spop %344 }
 0x1d2   :  { %282 = vst [vmem:[#allocation13 + $0x1] sm:$0x1] %v281_v3  ;;  %v288_v7 = vstv %s345_s21 }
 0x1d3   :  { %286 = vst [vmem:[#allocation13 + $0x2] sm:$0x1] %v285_v6  ;;  %v289_v8 = vadd.f32 %v288_v7, %v287_v5 }
 0x1d5   :  { %290 = vst [vmem:[#allocation13 + $0x3] sm:$0x1] %v289_v8 }
 0x1d8   :  { %v296_v14 = vld [vmem:[#allocation13] sm:$0x1] }
 0x1d9   :  { %v305_v15 = vld [vmem:[#allocation13 + $0x1] sm:$0x1] }
 0x1da   :  { %v308_v19 = vld [vmem:[#allocation13 + $0x2] sm:$0x1] }
 0x1dc   :  { %v294_v9 = vld [vmem:[#allocation13 + $0x3] sm:$0x1] }
 0x1dd   :  { %v295_v10 = vmul.f32 16.0, %v294_v9 }
 0x1df   :  { %299 = vperm.xlu1 %364, %v295_v10  }
 0x1e3   :  { %311 = vperm.xlu1 %364, %v294_v9  }
 0x25e   :  { %v300_v11 = vpop.permute.xlu1 %299 }
 0x25f   :  { %373 = vrcp.f32 %v300_v11 }
 0x262   :  { %v312_v12 = vpop.permute.xlu1 %311 }
 0x263   :  { %375 = vrcp.f32 %v312_v12 }
 0x269   :  { %v374_v13 = vpop.eup %373 }
 0x26a   :  { %v303_v16 = vmul.f32 %v374_v13, %v296_v14  ;;  %v306_v17 = vmul.f32 %v374_v13, %v305_v15 }
 0x26c   :  { %304 = vst [vmem:[#allocation13] sm:$0x1] %v303_v16  ;;  %307 = vst [vmem:[#allocation13 + $0x1] sm:$0x1] %v306_v17 }
 0x26d   :  { %v376_v18 = vpop.eup %375 }
 0x26e   :  { %v315_v20 = vmul.f32 %v376_v18, %v308_v19 }
 0x270   :  { %316 = vst [vmem:[#allocation13 + $0x2] sm:$0x1] %v315_v20 }
 0x271   :  { %520 = shalt.err (!%p517_p10)
}
 0x272   :  { %s521_s24 = scalar_lea.hbm %s700_s6, 128 }
 0x273   :  { %p522_p11 = scmp.ne.s32.totalorder %s700_s6, %s521_s24  ;;  %p525_p12 = scmp.lt.u32.totalorder %s521_s24, %s700_s6 }
 0x275   :  { %p527_p13 = pnand %p525_p12, %p522_p11 }
 0x277   :  { %530 = shalt.err (!%p527_p13)
}
 0x278   :  { %326 = dma.vmem_to_hbm [thread:$0]  %s324_s0, 128, %s700_s6, [#allocation4]  }
 0x279   :  { %539 = dma.done.wait [#allocation4], 128  }
 0x27a   :  { %540 = vsyncadd [#allocation4], 4294967168 }
 0x27b   :  { %330 = vsyncpa [#allocation3], 1 }
 0x27c   :  { %331 = vsyncpa [#allocation6], 1 }
 0x27d   :  { %332 = vsyncpa [#allocation9], 1 }
 0x27e   :  { %333 = vsyncpa [#allocation12], 1 }
 0x27f   :  { %334 = vsyncpa [#allocation4], 1 }

</bundles_post_ra>
